<compile_context>
chip_gen: v7x
topology: tpu7x:2x2x1
jax: 0.10.0
libtpu: 0.0.40
codegen_flags: <defaults>
</compile_context>

<pallas_src>
from functools import partial

import jax
import jax.numpy as jnp
from jax.experimental import pallas as pl
from jax.experimental.pallas import tpu as pltpu


def _round_up(x, m):
    return ((x + m - 1) // m) * m


def _lap_comm_kernel(f_ref, ea_ref, eb_ref, o_ref, acc_ref, *, weight):
    """One grid step over a (row_tile, Cp) slab of fmap12.

    f_ref  : (row_tile, Cp)  fmap12 tile
    ea_ref : (1, Cp)         mesh_a eigenvalues (same block every step)
    eb_ref : (row_tile, 1)   mesh_b eigenvalues for these rows
    o_ref  : (1, 1)          scalar output (written once, on the last step)
    acc_ref: (8, Cp) f32     resident VMEM accumulator
    """
    step = pl.program_id(0)

    @pl.when(step == 0)
    def _():
        acc_ref[...] = jnp.zeros_like(acc_ref)

    f = f_ref[...].astype(jnp.float32)
    ea = ea_ref[...].astype(jnp.float32)      # (1, Cp)   -> broadcast over rows
    eb = eb_ref[...].astype(jnp.float32)      # (TB, 1)   -> broadcast over cols

    d = f * (ea - eb)                         # fmap*ea - eb*fmap, elementwise
    sq = d * d                                # |.|^2 (real inputs)

    # Fold rows onto the vreg-shaped accumulator: pure VPU adds, no per-step
    # XLU reduction and no per-step masked scalar store.
    tb, cp = sq.shape
    acc_ref[...] += jnp.sum(sq.reshape(tb // 8, 8, cp), axis=0)

    @pl.when(step == pl.num_programs(0) - 1)
    def _():
        total = jnp.sum(acc_ref[...]) * jnp.float32(weight)
        o_ref[...] = total.reshape(1, 1)


def laplacian_commutativity_loss(fmap12, evals_a, evals_b, weight=1.0):
    """Pallas port of LaplacianCommutativityLoss.forward.

    fmap12  : (R, C) functional map (rows align with mesh_b's spectrum,
              columns with mesh_a's spectrum, per the einsum indices).
    evals_a : (C,)   Laplacian eigenvalues of mesh_a (mesh_a.basis.vals).
    evals_b : (R,)   Laplacian eigenvalues of mesh_b (mesh_b.basis.vals).
    Returns a scalar float32.
    """
    R, C = fmap12.shape
    assert evals_a.shape == (C,) and evals_b.shape == (R,)

    # Lane-dense column padding (multiple of 128). Zero-padded fmap entries
    # contribute exactly 0 to the sum, so eigenvalue padding values are moot.
    cp = _round_up(C, 128)

    # Row tile: ~2 MiB of fmap per step (amortizes the ~0.35 us/step overhead,
    # keeps double-buffered VMEM use small on every TPU generation), but never
    # larger than the 8-rounded problem itself -> tiny inputs = single step.
    itemsize = jnp.dtype(fmap12.dtype).itemsize
    max_rows = max(8, ((2 * 1024 * 1024) // (itemsize * cp)) // 8 * 8)
    row_tile = min(max_rows, _round_up(R, 8))
    n_steps = pl.cdiv(R, row_tile)
    rp = n_steps * row_tile

    # Pad in the input dtype (keeps bf16 inputs bf16 in HBM); cast in-kernel.
    f_pad = jnp.pad(fmap12, ((0, rp - R), (0, cp - C)))
    ea_pad = jnp.pad(evals_a.reshape(1, C), ((0, 0), (0, cp - C)))
    eb_pad = jnp.pad(evals_b.reshape(R, 1), ((0, rp - R), (0, 0)))

    kernel = partial(_lap_comm_kernel, weight=float(weight))

    out = pl.pallas_call(
        kernel,
        out_shape=jax.ShapeDtypeStruct((1, 1), jnp.float32),
        grid=(n_steps,),
        in_specs=[
            pl.BlockSpec((row_tile, cp), lambda r: (r, 0)),
            pl.BlockSpec((1, cp), lambda r: (0, 0)),
            pl.BlockSpec((row_tile, 1), lambda r: (r, 0)),
        ],
        out_specs=pl.BlockSpec((1, 1), lambda r: (0, 0)),
        scratch_shapes=[pltpu.VMEM((8, cp), jnp.float32)],
        compiler_params=pltpu.CompilerParams(
            # Single axis is a reduction into resident scratch / output.
            dimension_semantics=("arbitrary",),
            vmem_limit_bytes=48 * 1024 * 1024,
        ),
        # TODO(synk): on v7x a leading "parallel" axis of size 2 with per-core
        # partial sums would engage both TensorCores; kept to one code path
        # that is correct and efficient on v5e/v6e/v7x.
    )(f_pad, ea_pad, eb_pad)
    return out[0, 0]


if __name__ == "__main__":
    WEIGHT = 0.5
    key = jax.random.PRNGKey(0)
    k1, k2, k3 = jax.random.split(key, 3)

    # Small shapes consistent with the module's forward:
    # fmap12 of shape (spectrum_size_b, spectrum_size_a) = (50, 32).
    R, C = 50, 32
    fmap12 = jax.random.normal(k1, (R, C), dtype=jnp.float32)
    evals_a = jax.random.uniform(k2, (C,), dtype=jnp.float32) * 10.0
    evals_b = jax.random.uniform(k3, (R,), dtype=jnp.float32) * 10.0

    loss = laplacian_commutativity_loss(fmap12, evals_a, evals_b, weight=WEIGHT)
    loss = jax.block_until_ready(loss)

    # Pure-JAX reference mirroring the PyTorch semantics.
    a = fmap12 * evals_a[None, :]
    b = evals_b[:, None] * fmap12
    ref = WEIGHT * jnp.mean(jnp.sum(jnp.abs(a - b) ** 2, axis=(-2, -1)))
    assert jnp.allclose(loss, ref, rtol=1e-5, atol=1e-5), (loss, ref)

    # Also exercise the multi-step tiled path (row tiling + column padding).
    R2, C2 = 8192, 96
    f2 = jax.random.normal(k1, (R2, C2), dtype=jnp.float32)
    ea2 = jax.random.uniform(k2, (C2,), dtype=jnp.float32)
    eb2 = jax.random.uniform(k3, (R2,), dtype=jnp.float32)
    loss2 = jax.block_until_ready(
        laplacian_commutativity_loss(f2, ea2, eb2, weight=1.0)
    )
    ref2 = jnp.sum((f2 * ea2[None, :] - eb2[:, None] * f2) ** 2)
    assert jnp.allclose(loss2, ref2, rtol=1e-3, atol=1e-2), (loss2, ref2)

    print("KERNEL_OK")
</pallas_src>

<mosaic_0001>
module attributes {stable_mosaic.version = 11 : i64} {
  func.func @_lap_comm_kernel(%arg0: i32, %arg1: memref<56x128xf32, #tpu.memory_space<vmem>>, %arg2: memref<1x128xf32, #tpu.memory_space<vmem>>, %arg3: memref<56x1xf32, #tpu.memory_space<vmem>>, %arg4: memref<1x1xf32, #tpu.memory_space<vmem>>, %arg5: memref<8x128xf32, #tpu.memory_space<vmem>>) attributes {dimension_semantics = [#tpu.dimension_semantics<arbitrary>], iteration_bounds = array<i64: 1>, scalar_prefetch = 0 : i64, scratch_operands = 1 : i64, tpu.core_type = #tpu.core_type<tc>, window_params = [{transform_indices = @transform_0, window_bounds = array<i64: 56, 128>}, {pipeline_mode = #tpu.pipeline_mode<synchronous>, transform_indices = @transform_1, window_bounds = array<i64: 1, 128>}, {transform_indices = @transform_2, window_bounds = array<i64: 56, 1>}, {pipeline_mode = #tpu.pipeline_mode<synchronous>, transform_indices = @transform_3, window_bounds = array<i64: 1, 1>}]} {
    %c0_i32 = arith.constant 0 : i32
    %0 = arith.cmpi eq, %arg0, %c0_i32 : i32
    %1 = arith.extui %0 : i1 to i32
    %c0_i32_0 = arith.constant 0 : i32
    %2 = arith.cmpi ne, %1, %c0_i32_0 : i32
    scf.if %2 {
      %cst_12 = arith.constant 0.000000e+00 : f32
      %19 = vector.broadcast %cst_12 : f32 to vector<8x128xf32>
      %c0_13 = arith.constant 0 : index
      %c0_14 = arith.constant 0 : index
      %20 = vector.load %arg5[%c0_13, %c0_14] : memref<8x128xf32, #tpu.memory_space<vmem>>, vector<8x128xf32>
      tpu.vector_store %arg5[%c0_13, %c0_14], %19 {strides = array<i32>} : memref<8x128xf32, #tpu.memory_space<vmem>>, vector<8x128xf32>,
    } else {
    }
    %c0 = arith.constant 0 : index
    %c0_1 = arith.constant 0 : index
    %3 = vector.load %arg1[%c0, %c0_1] : memref<56x128xf32, #tpu.memory_space<vmem>>, vector<56x128xf32>
    %c0_2 = arith.constant 0 : index
    %c0_3 = arith.constant 0 : index
    %4 = vector.load %arg2[%c0_2, %c0_3] : memref<1x128xf32, #tpu.memory_space<vmem>>, vector<1x128xf32>
    %c0_4 = arith.constant 0 : index
    %c0_5 = arith.constant 0 : index
    %5 = vector.load %arg3[%c0_4, %c0_5] : memref<56x1xf32, #tpu.memory_space<vmem>>, vector<56x1xf32>
    %6 = vector.broadcast %4 : vector<1x128xf32> to vector<56x128xf32>
    %7 = vector.broadcast %5 : vector<56x1xf32> to vector<56x128xf32>
    %8 = arith.subf %6, %7 : vector<56x128xf32>
    %9 = arith.mulf %3, %8 : vector<56x128xf32>
    %10 = arith.mulf %9, %9 : vector<56x128xf32>
    %c0_6 = arith.constant 0 : index
    %c0_7 = arith.constant 0 : index
    %11 = vector.load %arg5[%c0_6, %c0_7] : memref<8x128xf32, #tpu.memory_space<vmem>>, vector<8x128xf32>
    %12 = vector.shape_cast %10 : vector<56x128xf32> to vector<7x8x128xf32>
    %cst = arith.constant dense<0.000000e+00> : vector<8x128xf32>
    %13 = vector.multi_reduction <add>, %12, %cst [0] : vector<7x8x128xf32> to vector<8x128xf32>
    %14 = arith.addf %11, %13 : vector<8x128xf32>
    %c0_8 = arith.constant 0 : index
    %c0_9 = arith.constant 0 : index
    %15 = vector.load %arg5[%c0_8, %c0_9] : memref<8x128xf32, #tpu.memory_space<vmem>>, vector<8x128xf32>
    tpu.vector_store %arg5[%c0_8, %c0_9], %14 {strides = array<i32>} : memref<8x128xf32, #tpu.memory_space<vmem>>, vector<8x128xf32>,
    %c0_i32_10 = arith.constant 0 : i32
    %16 = arith.cmpi eq, %arg0, %c0_i32_10 : i32
    %17 = arith.extui %16 : i1 to i32
    %c0_i32_11 = arith.constant 0 : i32
    %18 = arith.cmpi ne, %17, %c0_i32_11 : i32
    scf.if %18 {
      %c0_12 = arith.constant 0 : index
      %c0_13 = arith.constant 0 : index
      %19 = vector.load %arg5[%c0_12, %c0_13] : memref<8x128xf32, #tpu.memory_space<vmem>>, vector<8x128xf32>
      %20 = vector.shape_cast %19 : vector<8x128xf32> to vector<1x8x128xf32>
      %cst_14 = arith.constant dense<0.000000e+00> : vector<1xf32>
      %21 = vector.multi_reduction <add>, %20, %cst_14 [1, 2] : vector<1x8x128xf32> to vector<1xf32>
      %22 = vector.shape_cast %21 : vector<1xf32> to vector<1x1x1xf32>
      %23 = vector.extract %22[0, 0, 0] : f32 from vector<1x1x1xf32>
      %cst_15 = arith.constant 5.000000e-01 : f32
      %24 = arith.mulf %23, %cst_15 : f32
      %25 = vector.broadcast %24 : f32 to vector<1x1xf32>
      %c0_16 = arith.constant 0 : index
      %c0_17 = arith.constant 0 : index
      %26 = vector.load %arg4[%c0_16, %c0_17] : memref<1x1xf32, #tpu.memory_space<vmem>>, vector<1x1xf32>
      tpu.vector_store %arg4[%c0_16, %c0_17], %25 {strides = array<i32>} : memref<1x1xf32, #tpu.memory_space<vmem>>, vector<1x1xf32>,
    } else {
    }
    return
  }
  func.func @transform_0(%arg0: i32) -> (i32, i32) {
    %c0_i32 = arith.constant 0 : i32
    %c0_i32_0 = arith.constant 0 : i32
    return %arg0, %c0_i32 : i32, i32
  }
  func.func @transform_1(%arg0: i32) -> (i32, i32) {
    %c0_i32 = arith.constant 0 : i32
    %c0_i32_0 = arith.constant 0 : i32
    %c0_i32_1 = arith.constant 0 : i32
    return %c0_i32, %c0_i32_0 : i32, i32
  }
  func.func @transform_2(%arg0: i32) -> (i32, i32) {
    %c0_i32 = arith.constant 0 : i32
    %c0_i32_0 = arith.constant 0 : i32
    return %arg0, %c0_i32 : i32, i32
  }
  func.func @transform_3(%arg0: i32) -> (i32, i32) {
    %c0_i32 = arith.constant 0 : i32
    %c0_i32_0 = arith.constant 0 : i32
    %c0_i32_1 = arith.constant 0 : i32
    return %c0_i32, %c0_i32_0 : i32, i32
  }
}

</mosaic_0001>

<bundles_post_ra>
// kernel: tpu_custom_call.1
= control target key start
LH: loop header
LB: loop body
LE: loop exit
PB: predicated region body
PF: predicated region fallthrough
CT: control target
= control target key end

     0   :  { %v168_v2 = vmov 0   ;;  %s247_s0 = inlined_call_operand.vmem [shape: f32[56,128], index: 0, kind: input, shape index: {}]   ;;  %s248_s1 = inlined_call_operand.vmem [shape: f32[1,128], index: 1, kind: input, shape index: {}]   ;;  %s249_s2 = inlined_call_operand.vmem [shape: f32[56,1], index: 2, kind: input, shape index: {}]   ;;  %s250_s3 = inlined_call_operand.hbm [shape: f32[1,1], index: 3, kind: output, shape index: {}]  }
   0x1   :  { %v30_v0 = vld [vmem:[%s249_s2 + $0x10] sm:$0xff]  ;;  %v28_v1 = vld [vmem:[%s249_s2] sm:$0xff]  ;;  %143 = vset.pattern.permute.xlu1 %v168_v2  ;;  %142 = vset.pattern.permute.xlu0 %v168_v2  ;;  %v31_v3 = vld [vmem:[%s249_s2 + $0x18] sm:$0xff] }
   0x2   :  { %53 = vperm.xlu1 %143, %v30_v0   ;;  %43 = vperm.xlu0 %142, %v28_v1   ;;  %v29_v4 = vld [vmem:[%s249_s2 + $0x8] sm:$0xff] }
   0x3   :  { %8 = vsyncpa [#allocation4], 0  ;;  %v33_v5 = vld [vmem:[%s249_s2 + $0x28] sm:$0xff]  ;;  %v32_v6 = vld [vmem:[%s249_s2 + $0x20] sm:$0xff]  ;;  %vm121_vm0 = vcmask 0  }
   0x4   :  { %v34_v7 = vld [vmem:[%s249_s2 + $0x30] sm:$0xff]  ;;  %v137_v8 = vld [vmem:[%s248_s1] ss:$0 sm:$0xff]  ;;  %v21_v18 = vld [vmem:[%s247_s0 + $0x8] sm:$0xff] }
   0x5   :  { %v20_v11 = vld [vmem:[%s247_s0] sm:$0xff]  ;;  %v22_v14 = vld [vmem:[%s247_s0 + $0x10] sm:$0xff]  ;;  %v23_v21 = vld [vmem:[%s247_s0 + $0x18] sm:$0xff] }
   0x6   :  { %58 = vperm.xlu1 %143, %v31_v3   ;;  %48 = vperm.xlu0 %142, %v29_v4   ;;  %v24_v27 = vld [vmem:[%s247_s0 + $0x20] sm:$0xff]  ;;  %v25_v32 = vld [vmem:[%s247_s0 + $0x28] sm:$0xff]  ;;  %v26_v37 = vld [vmem:[%s247_s0 + $0x30] sm:$0xff]  ;;  %s169_s0 = smov [#allocation3]  }
   0x7   :  { %s129_s13 = sshll.u32 %s169_s0, 4  ;;  %s130_s13 = int_to_ptr.vmem [resolvable:$true] %s129_s13 }
   0x8   :  { %s144_s16 = scalar_lea.vmem %s130_s13, 16  ;;  %s148_s17 = scalar_lea.vmem %s130_s13, 32 }
   0x9   :  { %p145_p0 = scmp.ne.s32.totalorder %s130_s13, %s144_s16  ;;  %p149_p1 = scmp.lt.s32.totalorder %s130_s13, %s130_s13 }
   0xa   :  { %68 = vperm.xlu1 %143, %v33_v5   ;;  %63 = vperm.xlu0 %142, %v32_v6   ;;  %p150_p2 = scmp.lt.s32.totalorder %s148_s17, %s144_s16 }
   0xc   :  { %p151_p3 = por %p150_p2, %p149_p1 }
   0xe   :  { %73 = vperm.xlu0 %142, %v34_v7   ;;  %p152_p4 = pnand %p151_p3, %p145_p0 }
  0x81   :  { %v54_v9 = vpop.permute.xlu1 %53  ;;  %v44_v10 = vpop.permute.xlu0 %43 }
  0x82   :  { %v76_v12 = vsub.f32 %v137_v8, %v44_v10  ;;  %v78_v13 = vsub.f32 %v137_v8, %v54_v9 }
  0x84   :  { %v83_v15 = vmul.f32 %v76_v12, %v20_v11  ;;  %v85_v22 = vmul.f32 %v78_v13, %v22_v14 }
  0x85   :  { %v59_v16 = vpop.permute.xlu1 %58  ;;  %v49_v17 = vpop.permute.xlu0 %48 }
  0x86   :  { %v79_v19 = vsub.f32 %v137_v8, %v59_v16  ;;  %v77_v20 = vsub.f32 %v137_v8, %v49_v17  ;;  %v90_v24 = vmul.f32 %v83_v15, %v83_v15  ;;  %v92_v33 = vmul.f32 %v85_v22, %v85_v22 }
  0x88   :  { %v84_v23 = vmul.f32 %v77_v20, %v21_v18  ;;  %v86_v28 = vmul.f32 %v79_v19, %v23_v21 }
  0x89   :  { %v69_v25 = vpop.permute.xlu1 %68  ;;  %v64_v26 = vpop.permute.xlu0 %63 }
  0x8a   :  { %v91_v29 = vmul.f32 %v84_v23, %v84_v23  ;;  %v81_v30 = vsub.f32 %v137_v8, %v69_v25  ;;  %v80_v31 = vsub.f32 %v137_v8, %v64_v26  ;;  %v93_v38 = vmul.f32 %v86_v28, %v86_v28 }
  0x8c   :  { %v98_v34 = vadd.f32 %v91_v29, %v90_v24  ;;  %v87_v35 = vmul.f32 %v80_v31, %v24_v27  ;;  %v88_v40 = vmul.f32 %v81_v30, %v25_v32 }
  0x8d   :  { %v74_v36 = vpop.permute.xlu0 %73 }
  0x8e   :  { %v99_v39 = vadd.f32 %v98_v34, %v92_v33  ;;  %v82_v41 = vsub.f32 %v137_v8, %v74_v36  ;;  %v94_v42 = vmul.f32 %v87_v35, %v87_v35  ;;  %v95_v45 = vmul.f32 %v88_v40, %v88_v40 }
  0x90   :  { %v100_v43 = vadd.f32 %v99_v39, %v93_v38  ;;  %v89_v44 = vmul.f32 %v82_v41, %v26_v37 }
  0x92   :  { %v101_v46 = vadd.f32 %v100_v43, %v94_v42  ;;  %v96_v47 = vmul.f32 %v89_v44, %v89_v44 }
  0x94   :  { %v102_v48 = vadd.f32 %v101_v46, %v95_v45 }
  0x96   :  { %v103_v49 = vadd.f32 %v102_v48, %v96_v47 }
  0x98   :  { %110 = vadd.xlane.f32.xlu1 %v103_v49 }
 0x125   :  { %v111_v50 = vpop.xlane.xlu1 %110 }
 0x126   :  { %v112_v51 = vrot.slane %v111_v50, 4 }
 0x128   :  { %v113_v52 = vadd.f32 %v112_v51, %v111_v50 }
 0x12a   :  { %v114_v53 = vrot.slane %v113_v52, 2 }
 0x12c   :  { %v115_v54 = vadd.f32 %v114_v53, %v113_v52 }
 0x12e   :  { %v116_v55 = vrot.slane %v115_v54, 1 }
 0x130   :  { %v117_v56 = vadd.f32 %v116_v55, %v115_v54 }
 0x132   :  { %138 = vpush %v117_v56 }
 0x163   :  { %s139_s14 = spop %138 }
 0x164   :  { %s119_s15 = smul.f32 0.5, %s139_s14 }
 0x166   :  { %v120_v57 = vstv %s119_s15 }
 0x167   :  { %122 = vst.msk [vmem:[#allocation3] sm:$0x1] %vm121_vm0, %v120_v57 }
 0x168   :  { %155 = shalt.err (!%p152_p4)
}
 0x169   :  { %s156_s20 = scalar_lea.hbm %s250_s3, 16 }
 0x16a   :  { %p157_p5 = scmp.ne.s32.totalorder %s250_s3, %s156_s20  ;;  %p160_p6 = scmp.lt.u32.totalorder %s156_s20, %s250_s3 }
 0x16c   :  { %p162_p7 = pnand %p160_p6, %p157_p5 }
 0x16e   :  { %165 = shalt.err (!%p162_p7)
}
 0x16f   :  { %132 = dma.vmem_to_hbm [thread:$0]  %s130_s13, 16, %s250_s3, [#allocation4]  }
 0x170   :  { %166 = dma.done.wait [#allocation4], 16  }
 0x171   :  { %167 = vsyncadd [#allocation4], 4294967280 }
 0x172   :  { %136 = vsyncpa [#allocation4], 1 }

</bundles_post_ra>
